<compile_context>
chip_gen: v5e
topology: v5e:2x2
jax: 0.10.0
libtpu: 0.0.40
codegen_flags: <defaults>
</compile_context>

<pallas_src>
import jax
import jax.numpy as jnp
from jax import lax
from jax.experimental import pallas as pl
from jax.experimental.pallas import tpu as pltpu

INNER = 32            # inner_size in Net.__init__
NEG_SLOPE = 0.01      # torch.nn.functional.leaky_relu default
LANES = 128
GROUPS = LANES // INNER   # 4 atoms' 32-wide feature vectors per 128-lane chunk


def _round_up(x, m):
    return (x + m - 1) // m * m


def net_kernel(left_ref, right_ref, w1a_ref, w1b_ref, b1_ref, w2_ref, b2_ref,
               out_ref):
    # left_ref / right_ref: (tb, N*32) row-major node features of this batch
    # tile; w1a_ref / w1b_ref: (128, 32) = tile(W1_half, (4, 1)).
    tb, feat = left_ref.shape
    n_full = feat // LANES               # full 128-lane chunks (4 atoms each)
    rem = feat - n_full * LANES          # ragged tail lanes = (N % 4) * 32

    def pool(ref):
        """Sum node features into a lane-dense (tb, 128) f32 accumulator
        (4 interleaved 32-wide feature groups) plus an optional (tb, rem)
        tail for the last N % 4 atoms.  Loads chunk-by-chunk so the live set
        stays bounded (works for bf16 inputs, f32 accumulation)."""
        acc = None
        if n_full > 0:
            if n_full <= 8:                                 # short: unroll
                acc = ref[:, 0:LANES].astype(jnp.float32)
                for k in range(1, n_full):
                    acc = acc + ref[:, k * LANES:(k + 1) * LANES].astype(
                        jnp.float32)
            else:                                           # long: rolled loop
                def body(k, a):
                    off = pl.multiple_of(k * LANES, LANES)
                    return a + ref[:, pl.ds(off, LANES)].astype(jnp.float32)
                acc = lax.fori_loop(0, n_full, body,
                                    jnp.zeros((tb, LANES), jnp.float32))
        tail = None
        if rem > 0:
            tail = ref[:, n_full * LANES:feat].astype(jnp.float32)
        return acc, tail

    acc_l, tail_l = pool(left_ref)
    acc_r, tail_r = pool(right_ref)

    # cat((x_left, x_right), -1) @ W1.T  ==  x_left @ W1a + x_right @ W1b.
    # The lane-dense group sums contract directly against the 4x-tiled W1
    # halves (mathematically identical to folding groups first).
    w1a = w1a_ref[...]
    w1b = w1b_ref[...]
    y = jnp.zeros((tb, INNER), jnp.float32)
    if acc_l is not None:
        y = y + jnp.dot(acc_l, w1a, preferred_element_type=jnp.float32)
        y = y + jnp.dot(acc_r, w1b, preferred_element_type=jnp.float32)
    if tail_l is not None:   # ragged last N % 4 atoms: rem = (N % 4) * 32
        y = y + jnp.dot(tail_l, w1a[:rem, :],
                        preferred_element_type=jnp.float32)
        y = y + jnp.dot(tail_r, w1b[:rem, :],
                        preferred_element_type=jnp.float32)
    y = y + b1_ref[...]
    y = jnp.where(y >= 0, y, NEG_SLOPE * y)                 # leaky_relu

    out = (jnp.dot(y, w2_ref[...], preferred_element_type=jnp.float32)
           + b2_ref[...])                                   # (tb, 1)
    out_ref[...] = out.astype(out_ref.dtype)


def _tpu_vmem_bytes():
    """Physical VMEM capacity; falls back to the v7x floor (64 MiB)."""
    try:
        cap = getattr(pltpu.get_tpu_info(), "vmem_capacity_bytes", None)
        if cap:
            return int(cap)
    except Exception:
        pass
    return 64 * 1024 * 1024


def _choose_config(batch, feat_cols, itemsize):
    """Batch tile + vmem limit, sized per TPU generation.

    - tile is a multiple of 8 (f32) / 16 (bf16) chosen to minimize tail
      padding: steps = cdiv(B, cap), tb = round_up(cdiv(B, steps), mult)
    - >= 2 grid steps whenever B allows it (v7x: two TensorCores)
    - budgets derived from physical VMEM (64 MiB v7x, 128 MiB v5e/v6e)
    """
    vmem = _tpu_vmem_bytes()
    vmem_limit = min((vmem * 3) // 4, 96 * 1024 * 1024)  # 48 MiB v7x, 96 MiB v5e/v6e
    stream_budget = vmem_limit // 2       # 2 input streams x 2 pipeline buffers
    mult = 8 if itemsize >= 4 else 16     # sublane multiple (bf16 packs 16 rows)
    row_bytes = feat_cols * itemsize
    tb_cap = max(mult, ((stream_budget // (4 * row_bytes)) // mult) * mult)
    steps = pl.cdiv(batch, tb_cap)
    if batch > mult:
        steps = max(steps, 2)             # keep both v7x TensorCores busy
    tb = min(_round_up(pl.cdiv(batch, steps), mult), tb_cap)
    # Huge-N escape hatch (see TODO at top of file): keep double-buffering
    # alive by raising the limit toward physical VMEM.
    need = 4 * tb * row_bytes + (8 << 20)
    if need > vmem_limit:
        vmem_limit = min((vmem * 9) // 10, need)
    return tb, int(vmem_limit)


@jax.jit
def net_forward(left, right, params):
    """left, right: (B, N, 32) per-atom hidden features (f32 or bf16).

    The kernel streams the inputs at their given dtype (no wrapper-side cast,
    which would cost an extra HBM pass) and accumulates the sum-pool in f32,
    so feeding bf16 h_atm halves the dominant HBM traffic.  Returns (B, 1) f32.
    """
    w1a, w1b, b1, w2, b2 = params
    B, N, D = left.shape
    assert D == INNER and N >= 1

    # Free row-major view (no copy, no atom-axis padding); the ragged
    # N % 4 tail is handled inside the kernel with a static in-bounds slice.
    F = N * INNER
    left2 = left.reshape(B, F)
    right2 = right.reshape(B, F)

    # Pre-tile W1's halves 4x along the contraction dim so the kernel can
    # contract the lane-dense (tb, 128) pooled sums directly on the MXU.
    w1a_t = jnp.tile(w1a, (GROUPS, 1))    # (128, 32)
    w1b_t = jnp.tile(w1b, (GROUPS, 1))    # (128, 32)

    tb, vmem_limit = _choose_config(B, F, left.dtype.itemsize)
    b_pad = _round_up(B, tb)
    if b_pad != B:
        # Minimal tail padding only (< one tile of zero rows); zero rows are
        # sum-pool safe and are sliced off below.
        left2 = jnp.pad(left2, ((0, b_pad - B), (0, 0)))
        right2 = jnp.pad(right2, ((0, b_pad - B), (0, 0)))
    grid = (b_pad // tb,)

    feat_spec = pl.BlockSpec((tb, F), lambda i: (i, 0))
    # Parameters: constant index_maps -> fetched once, resident across steps.
    w1_spec = pl.BlockSpec((LANES, INNER), lambda i: (0, 0))
    b1_spec = pl.BlockSpec((1, INNER), lambda i: (0, 0))
    w2_spec = pl.BlockSpec((INNER, 1), lambda i: (0, 0))
    b2_spec = pl.BlockSpec((1, 1), lambda i: (0, 0))

    out = pl.pallas_call(
        net_kernel,
        out_shape=jax.ShapeDtypeStruct((b_pad, 1), jnp.float32),
        grid=grid,
        in_specs=[feat_spec, feat_spec, w1_spec, w1_spec, b1_spec, w2_spec,
                  b2_spec],
        out_specs=pl.BlockSpec((tb, 1), lambda i: (i, 0)),
        compiler_params=pltpu.CompilerParams(
            dimension_semantics=("parallel",),
            vmem_limit_bytes=vmem_limit,
        ),
    )(left2, right2, w1a_t, w1b_t, b1, w2, b2)
    return out[:B]


def init_params(key):
    """Deterministic parameter init matching nn.Linear shapes.

    l1: Linear(2*INNER, INNER) -> W1 (INNER, 2*INNER), b1 (INNER,)
    l2: Linear(INNER, 1)       -> W2 (1, INNER),       b2 (1,)
    Stored pre-transposed as (in, out); W1 split into the halves that
    multiply the left / right pooled features.
    """
    k1, k2, k3, k4 = jax.random.split(key, 4)
    lim1 = 1.0 / jnp.sqrt(2.0 * INNER)
    lim2 = 1.0 / jnp.sqrt(1.0 * INNER)
    w1 = jax.random.uniform(k1, (2 * INNER, INNER), jnp.float32, -lim1, lim1)
    b1 = jax.random.uniform(k2, (1, INNER), jnp.float32, -lim1, lim1)
    w2 = jax.random.uniform(k3, (INNER, 1), jnp.float32, -lim2, lim2)
    b2 = jax.random.uniform(k4, (1, 1), jnp.float32, -lim2, lim2)
    w1a, w1b = w1[:INNER], w1[INNER:]
    return (w1a, w1b, b1, w2, b2)


def reference_forward(left, right, params):
    """Pure-JAX reference of the same computation."""
    w1a, w1b, b1, w2, b2 = params
    hl = left.sum(axis=1)
    hr = right.sum(axis=1)
    y = hl @ w1a + hr @ w1b + b1
    y = jnp.where(y >= 0, y, NEG_SLOPE * y)
    return y @ w2 + b2


if __name__ == "__main__":
    key = jax.random.PRNGKey(0)
    k_left, k_right, k_params = jax.random.split(key, 3)

    # 2 graph pairs, 10 atoms per graph, hidden=32: exercises the ragged atom
    # tail (10 % 4 != 0) and batch-tail handling.  bf16 node features halve
    # the HBM stream; pooling still accumulates in f32 inside the kernel.
    B, N, D = 2, 10, INNER
    left = jax.random.normal(k_left, (B, N, D), jnp.float32).astype(jnp.bfloat16)
    right = jax.random.normal(k_right, (B, N, D), jnp.float32).astype(jnp.bfloat16)
    params = init_params(k_params)

    out = net_forward(left, right, params)
    jax.block_until_ready(out)

    ref = reference_forward(left.astype(jnp.float32),
                            right.astype(jnp.float32), params)
    assert out.shape == (B, 1), out.shape
    assert jnp.allclose(out, ref, atol=1e-4, rtol=1e-4), (out, ref)

    print("KERNEL_OK")
</pallas_src>

<mosaic_0001>
module attributes {stable_mosaic.version = 11 : i64} {
  func.func @net_kernel(%arg0: i32, %arg1: memref<16x320xbf16, #tpu.memory_space<vmem>>, %arg2: memref<16x320xbf16, #tpu.memory_space<vmem>>, %arg3: memref<128x32xf32, #tpu.memory_space<vmem>>, %arg4: memref<128x32xf32, #tpu.memory_space<vmem>>, %arg5: memref<1x32xf32, #tpu.memory_space<vmem>>, %arg6: memref<32x1xf32, #tpu.memory_space<vmem>>, %arg7: memref<1x1xf32, #tpu.memory_space<vmem>>, %arg8: memref<16x1xf32, #tpu.memory_space<vmem>>) attributes {dimension_semantics = [#tpu.dimension_semantics<parallel>], iteration_bounds = array<i64: 1>, scalar_prefetch = 0 : i64, scratch_operands = 0 : i64, tpu.core_type = #tpu.core_type<tc>, window_params = [{transform_indices = @transform_0, window_bounds = array<i64: 16, 320>}, {transform_indices = @transform_1, window_bounds = array<i64: 16, 320>}, {pipeline_mode = #tpu.pipeline_mode<synchronous>, transform_indices = @transform_2, window_bounds = array<i64: 128, 32>}, {pipeline_mode = #tpu.pipeline_mode<synchronous>, transform_indices = @transform_3, window_bounds = array<i64: 128, 32>}, {pipeline_mode = #tpu.pipeline_mode<synchronous>, transform_indices = @transform_4, window_bounds = array<i64: 1, 32>}, {pipeline_mode = #tpu.pipeline_mode<synchronous>, transform_indices = @transform_5, window_bounds = array<i64: 32, 1>}, {pipeline_mode = #tpu.pipeline_mode<synchronous>, transform_indices = @transform_6, window_bounds = array<i64: 1, 1>}, {transform_indices = @transform_7, window_bounds = array<i64: 16, 1>}]} {
    %c0 = arith.constant 0 : index
    %c0_0 = arith.constant 0 : index
    %0 = vector.load %arg1[%c0, %c0_0] : memref<16x320xbf16, #tpu.memory_space<vmem>>, vector<16x128xbf16>
    %1 = arith.extf %0 : vector<16x128xbf16> to vector<16x128xf32>
    %c0_1 = arith.constant 0 : index
    %c128 = arith.constant 128 : index
    %2 = vector.load %arg1[%c0_1, %c128] : memref<16x320xbf16, #tpu.memory_space<vmem>>, vector<16x128xbf16>
    %3 = arith.extf %2 : vector<16x128xbf16> to vector<16x128xf32>
    %4 = arith.addf %1, %3 : vector<16x128xf32>
    %c0_2 = arith.constant 0 : index
    %c256 = arith.constant 256 : index
    %5 = vector.load %arg1[%c0_2, %c256] : memref<16x320xbf16, #tpu.memory_space<vmem>>, vector<16x64xbf16>
    %6 = arith.extf %5 : vector<16x64xbf16> to vector<16x64xf32>
    %c0_3 = arith.constant 0 : index
    %c0_4 = arith.constant 0 : index
    %7 = vector.load %arg2[%c0_3, %c0_4] : memref<16x320xbf16, #tpu.memory_space<vmem>>, vector<16x128xbf16>
    %8 = arith.extf %7 : vector<16x128xbf16> to vector<16x128xf32>
    %c0_5 = arith.constant 0 : index
    %c128_6 = arith.constant 128 : index
    %9 = vector.load %arg2[%c0_5, %c128_6] : memref<16x320xbf16, #tpu.memory_space<vmem>>, vector<16x128xbf16>
    %10 = arith.extf %9 : vector<16x128xbf16> to vector<16x128xf32>
    %11 = arith.addf %8, %10 : vector<16x128xf32>
    %c0_7 = arith.constant 0 : index
    %c256_8 = arith.constant 256 : index
    %12 = vector.load %arg2[%c0_7, %c256_8] : memref<16x320xbf16, #tpu.memory_space<vmem>>, vector<16x64xbf16>
    %13 = arith.extf %12 : vector<16x64xbf16> to vector<16x64xf32>
    %c0_9 = arith.constant 0 : index
    %c0_10 = arith.constant 0 : index
    %14 = vector.load %arg3[%c0_9, %c0_10] : memref<128x32xf32, #tpu.memory_space<vmem>>, vector<128x32xf32>
    %c0_11 = arith.constant 0 : index
    %c0_12 = arith.constant 0 : index
    %15 = vector.load %arg4[%c0_11, %c0_12] : memref<128x32xf32, #tpu.memory_space<vmem>>, vector<128x32xf32>
    %cst = arith.constant 0.000000e+00 : f32
    %16 = vector.broadcast %cst : f32 to vector<16x32xf32>
    %cst_13 = arith.constant dense<0.000000e+00> : vector<16x32xf32>
    %17 = tpu.matmul %4, %14, %cst_13 {dimension_numbers = #tpu.dot_dimension_numbers<[1], [0], [0], [1], [0, 0, 1, 1], [], []>} : vector<16x128xf32>, vector<128x32xf32>, vector<16x32xf32> -> vector<16x32xf32>
    %18 = arith.addf %16, %17 : vector<16x32xf32>
    %cst_14 = arith.constant dense<0.000000e+00> : vector<16x32xf32>
    %19 = tpu.matmul %11, %15, %cst_14 {dimension_numbers = #tpu.dot_dimension_numbers<[1], [0], [0], [1], [0, 0, 1, 1], [], []>} : vector<16x128xf32>, vector<128x32xf32>, vector<16x32xf32> -> vector<16x32xf32>
    %20 = arith.addf %18, %19 : vector<16x32xf32>
    %21 = vector.extract_strided_slice %14 {offsets = [0, 0], sizes = [64, 32], strides = [1, 1]} : vector<128x32xf32> to vector<64x32xf32>
    %cst_15 = arith.constant dense<0.000000e+00> : vector<16x32xf32>
    %22 = tpu.matmul %6, %21, %cst_15 {dimension_numbers = #tpu.dot_dimension_numbers<[1], [0], [0], [1], [0, 0, 1, 1], [], []>} : vector<16x64xf32>, vector<64x32xf32>, vector<16x32xf32> -> vector<16x32xf32>
    %23 = arith.addf %20, %22 : vector<16x32xf32>
    %24 = vector.extract_strided_slice %15 {offsets = [0, 0], sizes = [64, 32], strides = [1, 1]} : vector<128x32xf32> to vector<64x32xf32>
    %cst_16 = arith.constant dense<0.000000e+00> : vector<16x32xf32>
    %25 = tpu.matmul %13, %24, %cst_16 {dimension_numbers = #tpu.dot_dimension_numbers<[1], [0], [0], [1], [0, 0, 1, 1], [], []>} : vector<16x64xf32>, vector<64x32xf32>, vector<16x32xf32> -> vector<16x32xf32>
    %26 = arith.addf %23, %25 : vector<16x32xf32>
    %c0_17 = arith.constant 0 : index
    %c0_18 = arith.constant 0 : index
    %27 = vector.load %arg5[%c0_17, %c0_18] : memref<1x32xf32, #tpu.memory_space<vmem>>, vector<1x32xf32>
    %28 = vector.broadcast %27 : vector<1x32xf32> to vector<16x32xf32>
    %29 = arith.addf %26, %28 : vector<16x32xf32>
    %cst_19 = arith.constant 0.000000e+00 : f32
    %30 = vector.broadcast %cst_19 : f32 to vector<16x32xf32>
    %31 = arith.cmpf oge, %29, %30 : vector<16x32xf32>
    %cst_20 = arith.constant 0.00999999977 : f32
    %32 = vector.broadcast %cst_20 : f32 to vector<16x32xf32>
    %33 = arith.mulf %32, %29 : vector<16x32xf32>
    %34 = arith.select %31, %29, %33 : vector<16x32xi1>, vector<16x32xf32>
    %c0_21 = arith.constant 0 : index
    %c0_22 = arith.constant 0 : index
    %35 = vector.load %arg6[%c0_21, %c0_22] : memref<32x1xf32, #tpu.memory_space<vmem>>, vector<32x1xf32>
    %cst_23 = arith.constant dense<0.000000e+00> : vector<16x1xf32>
    %36 = tpu.matmul %34, %35, %cst_23 {dimension_numbers = #tpu.dot_dimension_numbers<[1], [0], [0], [1], [0, 0, 1, 1], [], []>} : vector<16x32xf32>, vector<32x1xf32>, vector<16x1xf32> -> vector<16x1xf32>
    %c0_24 = arith.constant 0 : index
    %c0_25 = arith.constant 0 : index
    %37 = vector.load %arg7[%c0_24, %c0_25] : memref<1x1xf32, #tpu.memory_space<vmem>>, vector<1x1xf32>
    %38 = vector.broadcast %37 : vector<1x1xf32> to vector<16x1xf32>
    %39 = arith.addf %36, %38 : vector<16x1xf32>
    %c0_26 = arith.constant 0 : index
    %c0_27 = arith.constant 0 : index
    %40 = vector.load %arg8[%c0_26, %c0_27] : memref<16x1xf32, #tpu.memory_space<vmem>>, vector<16x1xf32>
    tpu.vector_store %arg8[%c0_26, %c0_27], %39 {strides = array<i32>} : memref<16x1xf32, #tpu.memory_space<vmem>>, vector<16x1xf32>,
    return
  }
  func.func @transform_0(%arg0: i32) -> (i32, i32) {
    %c0_i32 = arith.constant 0 : i32
    %c0_i32_0 = arith.constant 0 : i32
    return %arg0, %c0_i32 : i32, i32
  }
  func.func @transform_1(%arg0: i32) -> (i32, i32) {
    %c0_i32 = arith.constant 0 : i32
    %c0_i32_0 = arith.constant 0 : i32
    return %arg0, %c0_i32 : i32, i32
  }
  func.func @transform_2(%arg0: i32) -> (i32, i32) {
    %c0_i32 = arith.constant 0 : i32
    %c0_i32_0 = arith.constant 0 : i32
    %c0_i32_1 = arith.constant 0 : i32
    return %c0_i32, %c0_i32_0 : i32, i32
  }
  func.func @transform_3(%arg0: i32) -> (i32, i32) {
    %c0_i32 = arith.constant 0 : i32
    %c0_i32_0 = arith.constant 0 : i32
    %c0_i32_1 = arith.constant 0 : i32
    return %c0_i32, %c0_i32_0 : i32, i32
  }
  func.func @transform_4(%arg0: i32) -> (i32, i32) {
    %c0_i32 = arith.constant 0 : i32
    %c0_i32_0 = arith.constant 0 : i32
    %c0_i32_1 = arith.constant 0 : i32
    return %c0_i32, %c0_i32_0 : i32, i32
  }
  func.func @transform_5(%arg0: i32) -> (i32, i32) {
    %c0_i32 = arith.constant 0 : i32
    %c0_i32_0 = arith.constant 0 : i32
    %c0_i32_1 = arith.constant 0 : i32
    return %c0_i32, %c0_i32_0 : i32, i32
  }
  func.func @transform_6(%arg0: i32) -> (i32, i32) {
    %c0_i32 = arith.constant 0 : i32
    %c0_i32_0 = arith.constant 0 : i32
    %c0_i32_1 = arith.constant 0 : i32
    return %c0_i32, %c0_i32_0 : i32, i32
  }
  func.func @transform_7(%arg0: i32) -> (i32, i32) {
    %c0_i32 = arith.constant 0 : i32
    %c0_i32_0 = arith.constant 0 : i32
    return %arg0, %c0_i32 : i32, i32
  }
}

</mosaic_0001>

<bundles_post_ra>
// kernel: net_forward.1
= control target key start
LH: loop header
LB: loop body
LE: loop exit
PB: predicated region body
PF: predicated region fallthrough
CT: control target
= control target key end

     0   :  { %vm134_vm0 = vcmask 523264   ;;  %vm217_vm2 = vcmask 261120   ;;  %vm247_vm4 = vcmask 7168   ;;  %s455_s3 = inlined_call_operand.vmem [shape: f32[128,32], index: 3, kind: input, shape index: {}]   ;;  %s456_s2 = inlined_call_operand.vmem [shape: f32[128,32], index: 2, kind: input, shape index: {}]   ;;  %s457_s0 = inlined_call_operand.vmem [shape: bf16[16,320], index: 0, kind: input, shape index: {}]   ;;  %s458_s1 = inlined_call_operand.vmem [shape: bf16[16,320], index: 1, kind: input, shape index: {}]   ;;  %s459_s5 = inlined_call_operand.vmem [shape: f32[32,1], index: 5, kind: input, shape index: {}]   ;;  %s460_s4 = inlined_call_operand.vmem [shape: f32[1,32], index: 4, kind: input, shape index: {}]   ;;  %s461_s6 = inlined_call_operand.<no memory space> [shape: f32[1,1], index: 6, kind: input, shape index: {}]   ;;  %s462_s7 = inlined_call_operand.vmem [shape: f32[16,1], index: 7, kind: output, shape index: {}]  }
   0x1   :  { %v87_v0 = vld [vmem:[%s455_s3 + $0x78] sm:$0xff]  ;;  %v86_v2 = vld [vmem:[%s455_s3 + $0x70] sm:$0xff]  ;;  %v85_v4 = vld [vmem:[%s455_s3 + $0x68] sm:$0xff]  ;;  %v12_v59 = vstv %s461_s6 }
   0x2   :  { %v71_v1 = vld [vmem:[%s456_s2 + $0x78] sm:$0xff]  ;;  %88 = vmatpush.msra.mxu0 %v87_v0  ;;  %v70_v3 = vld [vmem:[%s456_s2 + $0x70] sm:$0xff]  ;;  %v69_v5 = vld [vmem:[%s456_s2 + $0x68] sm:$0xff]  ;;  %13 = vst [vmem:[#allocation2] sm:$0x1] %v12_v59 }
   0x3   :  { %111 = vmatpush.msra.mxu1 %v71_v1  ;;  %v84_v6 = vld [vmem:[%s455_s3 + $0x60] sm:$0xff]  ;;  %v63_v8 = vld [vmem:[%s456_s2 + $0x38] sm:$0xff]  ;;  %v62_v9 = vld [vmem:[%s456_s2 + $0x30] sm:$0xff] }
   0x4   :  { %89 = vmatpush.msra.mxu0 %v86_v2  ;;  %v68_v7 = vld [vmem:[%s456_s2 + $0x60] sm:$0xff]  ;;  %v83_v10 = vld [vmem:[%s455_s3 + $0x58] sm:$0xff]  ;;  %149 = vmatpush.msra.mxu2 %v63_v8  ;;  %v61_v13 = vld [vmem:[%s456_s2 + $0x28] sm:$0xff] }
   0x5   :  { %112 = vmatpush.msra.mxu1 %v70_v3  ;;  %v67_v11 = vld [vmem:[%s456_s2 + $0x58] sm:$0xff]  ;;  %v78_v14 = vld [vmem:[%s455_s3 + $0x30] sm:$0xff]  ;;  %v60_v17 = vld [vmem:[%s456_s2 + $0x20] sm:$0xff] }
   0x6   :  { %90 = vmatpush.msra.mxu0 %v85_v4  ;;  %v79_v12 = vld [vmem:[%s455_s3 + $0x38] sm:$0xff]  ;;  %v82_v15 = vld [vmem:[%s455_s3 + $0x50] sm:$0xff]  ;;  %150 = vmatpush.msra.mxu2 %v62_v9  ;;  %v77_v18 = vld [vmem:[%s455_s3 + $0x28] sm:$0xff] }
   0x7   :  { %113 = vmatpush.msra.mxu1 %v69_v5  ;;  %v66_v16 = vld [vmem:[%s456_s2 + $0x50] sm:$0xff]  ;;  %180 = vmatpush.msra.mxu3 %v79_v12  ;;  %v81_v19 = vld [vmem:[%s455_s3 + $0x48] sm:$0xff]  ;;  %v59_v21 = vld [vmem:[%s456_s2 + $0x18] sm:$0xff] }
   0x8   :  { %91 = vmatpush.msra.mxu0 %v84_v6  ;;  %v65_v20 = vld [vmem:[%s456_s2 + $0x48] sm:$0xff]  ;;  %151 = vmatpush.msra.mxu2 %v61_v13  ;;  %v76_v22 = vld [vmem:[%s455_s3 + $0x20] sm:$0xff]  ;;  %v58_v25 = vld [vmem:[%s456_s2 + $0x10] sm:$0xff] }
   0x9   :  { %114 = vmatpush.msra.mxu1 %v68_v7  ;;  %181 = vmatpush.msra.mxu3 %v78_v14  ;;  %v80_v23 = vld [vmem:[%s455_s3 + $0x40] sm:$0xff]  ;;  %v75_v26 = vld [vmem:[%s455_s3 + $0x18] sm:$0xff]  ;;  %v57_v27 = vld [vmem:[%s456_s2 + $0x8] sm:$0xff] }
   0xa   :  { %92 = vmatpush.msra.mxu0 %v83_v10  ;;  %v64_v24 = vld [vmem:[%s456_s2 + $0x40] sm:$0xff]  ;;  %152 = vmatpush.msra.mxu2 %v60_v17  ;;  %v74_v28 = vld [vmem:[%s455_s3 + $0x10] sm:$0xff]  ;;  %v38_v29 = vld [vmem:[%s457_s0 + $0x8] sm:$0xf] }
   0xb   :  { %115 = vmatpush.msra.mxu1 %v67_v11  ;;  %182 = vmatpush.msra.mxu3 %v77_v18  ;;  %v56_v30 = vld [vmem:[%s456_s2] sm:$0xff]  ;;  %v73_v31 = vld [vmem:[%s455_s3 + $0x8] sm:$0xff]  ;;  %v40_v33 = vunpack.c.l.bf16 %v38_v29  ;;  %v212_v38 = vld [vmem:[%s459_s5 + $0x18] sm:$0xff] }
   0xc   :  { %93 = vmatpush.msra.mxu0 %v82_v15  ;;  %153 = vmatpush.msra.mxu2 %v59_v21  ;;  %v52_v32 = vld [vmem:[%s458_s1 + $0x8] sm:$0xff]   ;;  %v72_v34 = vld [vmem:[%s455_s3] sm:$0xff]  ;;  %v39_v39 = vld [vmem:[%s457_s0 + $0x14] sm:$0xf] }
   0xd   :  { %116 = vmatpush.msra.mxu1 %v66_v16  ;;  %183 = vmatpush.msra.mxu3 %v76_v22  ;;  %v54_v35 = vunpack.c.l.bf16 %v52_v32  ;;  %v265_v36 = vld [vmem:[%s458_s1] sm:$0xff]   ;;  %v41_v44 = vunpack.c.l.bf16 %v39_v39  ;;  %v53_v45 = vld [vmem:[%s458_s1 + $0x10] sm:$0xff]   ;;  %v45_v50 = vunpack.c.h.bf16 %v52_v32  ;;  %v210_v57 = vld [vmem:[%s459_s5 + $0x8] sm:$0xff] }
   0xe   :  { %94 = vmatpush.msra.mxu0 %v81_v19  ;;  %154 = vmatpush.msra.mxu2 %v58_v25  ;;  %v261_v37 = vld [vmem:[%s457_s0] sm:$0xff]   ;;  %v266_v40 = vunpack.c.l.bf16 %v265_v36  ;;  %v267_v41 = vunpack.c.h.bf16 %v265_v36  ;;  %v55_v48 = vunpack.c.h.bf16 %v53_v45  ;;  %v29_v49 = vld [vmem:[%s457_s0 + $0xc] sm:$0xff]   ;;  %v49_v51 = vunpack.c.l.bf16 %v53_v45 }
   0xf   :  { %117 = vmatpush.msra.mxu1 %v65_v20  ;;  %184 = vmatpush.msra.mxu3 %v75_v26  ;;  %v262_v42 = vunpack.c.l.bf16 %v261_v37  ;;  %v263_v43 = vunpack.c.h.bf16 %v261_v37  ;;  %v31_v52 = vunpack.c.l.bf16 %v29_v49  ;;  %v35_v53 = vunpack.c.h.bf16 %v29_v49  ;;  %v211_v56 = vld [vmem:[%s459_s5 + $0x10] sm:$0xff]  ;;  %v209_v58 = vld [vmem:[%s459_s5] sm:$0xff] }
  0x10   :  { %95 = vmatpush.msra.mxu0 %v80_v23  ;;  %155 = vmatpush.msra.mxu2 %v57_v27  ;;  %v50_v46 = vadd.f32 %v267_v41, %v266_v40  ;;  %v51_v54 = vadd.f32 %v49_v51, %v45_v50  ;;  %v268_v2 = vld [vmem:[%s460_s4] ss:$0 sm:$0xff] }
  0x11   :  { %118 = vmatpush.msra.mxu1 %v64_v24  ;;  %185 = vmatpush.msra.mxu3 %v74_v28  ;;  %v36_v47 = vadd.f32 %v263_v43, %v262_v42  ;;  %v37_v55 = vadd.f32 %v35_v53, %v31_v52 }
  0x12   :  { %96 = vmatpush.msra.mxu0 %v79_v12  ;;  %156 = vmatpush.msra.mxu2 %v56_v30 }
  0x13   :  { %119 = vmatpush.msra.mxu1 %v63_v8  ;;  %186 = vmatpush.msra.mxu3 %v73_v31 }
  0x14   :  { %97 = vmatpush.msra.mxu0 %v78_v14  ;;  %254 = vmatmul.msk.f32.vlgmr.msra.gmra.mxu2 %vm134_vm0, %v40_v33 }
  0x15   :  { %120 = vmatpush.msra.mxu1 %v62_v9  ;;  %187 = vmatpush.msra.mxu3 %v72_v34 }
  0x16   :  { %98 = vmatpush.msra.mxu0 %v77_v18  ;;  %256 = vmatmul.msk.f32.vlgmr.msra.gmra.mxu3 %vm134_vm0, %v54_v35 }
  0x17   :  { %121 = vmatpush.msra.mxu1 %v61_v13  ;;  %236 = vmatpush.msrb.mxu2 %v212_v38 }
  0x18   :  { %99 = vmatpush.msra.mxu0 %v76_v22 }
  0x19   :  { %122 = vmatpush.msra.mxu1 %v60_v17  ;;  %237 = vmatpush.msrb.mxu2 %v211_v56  ;;  %v269_v17 = vld [vmem:[#allocation2] ss:$0 sm:$0xff] }
  0x1a   :  { %100 = vmatpush.msra.mxu0 %v75_v26 }
  0x1b   :  { %123 = vmatpush.msra.mxu1 %v59_v21  ;;  %238 = vmatpush.msrb.mxu2 %v210_v57 }
  0x1c   :  { %101 = vmatpush.msra.mxu0 %v74_v28  ;;  %255 = vmatmul.msk.f32.gmra.mxu2 %vm134_vm0, %v41_v44 }
  0x1d   :  { %124 = vmatpush.msra.mxu1 %v58_v25  ;;  %239 = vmatpush.msrb.mxu2 %v209_v58 }
  0x1e   :  { %102 = vmatpush.msra.mxu0 %v73_v31  ;;  %257 = vmatmul.msk.f32.gmra.mxu3 %vm134_vm0, %v55_v48 }
  0x1f   :  { %125 = vmatpush.msra.mxu1 %v57_v27 }
  0x20   :  { %103 = vmatpush.msra.mxu0 %v72_v34 }
  0x21   :  { %126 = vmatpush.msra.mxu1 %v56_v30  ;;  %104 = vmatmul.f32.vlgmr.msra.gmra.mxu0 %v50_v46 }
  0x22   :  { %127 = vmatmul.f32.vlgmr.msra.gmra.mxu1 %v36_v47 }
  0x29   :  { %107 = vmatmul.f32.gmra.mxu0 %v51_v54 }
  0x2a   :  { %130 = vmatmul.f32.gmra.mxu1 %v37_v55 }
  0x97   :  { %v158_v60 = vpop.f32.mrf.mxu2 }
  0x99   :  { %v189_v61 = vpop.f32.mrf.mxu3 }
  0x9e   :  { %v105_v62 = vpop.f32.mrf.mxu0 }
  0x9f   :  { %v128_v63 = vpop.f32.mrf.mxu1  ;;  %v161_v5 = vpop.f32.mrf.mxu2 }
  0xa0   :  { %v129_v0 = vadd.f32 %v128_v63, %v105_v62 }
  0xa1   :  { %v192_v10 = vpop.f32.mrf.mxu3 }
  0xa2   :  { %v164_v1 = vadd.f32 %v158_v60, %v129_v0 }
  0xa4   :  { %v195_v3 = vadd.f32 %v189_v61, %v164_v1 }
  0xa6   :  { %v201_v4 = vadd.f32 %v268_v2, %v195_v3  ;;  %v108_v6 = vpop.f32.mrf.mxu0 }
  0xa7   :  { %v131_v7 = vpop.f32.mrf.mxu1 }
  0xa8   :  { %v205_v8 = vmul.f32 0.01, %v201_v4  ;;  %v132_v9 = vadd.f32 %v131_v7, %v108_v6  ;;  %vm203_vm1 = vcmp.ge.f32.partialorder %v201_v4, 0.0 }
  0xaa   :  { %v165_v11 = vadd.f32 %v161_v5, %v132_v9  ;;  %v207_v12 = vsel %vm203_vm1, %v201_v4, %v205_v8 }
  0xab   :  { %258 = vmatmul.msk.f32.vlgmr.msrb.gmra.mxu2 %vm217_vm2, %v207_v12 }
  0xac   :  { %v196_v13 = vadd.f32 %v192_v10, %v165_v11 }
  0xae   :  { %v202_v14 = vadd.f32 %v268_v2, %v196_v13 }
  0xb0   :  { %vm204_vm3 = vcmp.ge.f32.partialorder %v202_v14, 0.0  ;;  %v206_v15 = vmul.f32 0.01, %v202_v14 }
  0xb2   :  { %v208_v16 = vsel %vm204_vm3, %v202_v14, %v206_v15 }
  0xb3   :  { %259 = vmatmul.msk.f32.gmra.mxu2 %vm217_vm2, %v208_v16 }
 0x12e   :  { %v241_v18 = vpop.f32.mrf.mxu2 }
 0x12f   :  { %v242_v19 = vadd.f32 %v269_v17, %v241_v18 }
 0x131   :  { %248 = vst.msk [vmem:[%s462_s7] sm:$0xff] %vm247_vm4, %v242_v19 }
 0x136   :  { %v244_v20 = vpop.f32.mrf.mxu2 }
 0x137   :  { %v245_v21 = vadd.f32 %v269_v17, %v244_v20 }
 0x139   :  { %249 = vst.msk [vmem:[%s462_s7 + $0x8] sm:$0xff] %vm247_vm4, %v245_v21 }

</bundles_post_ra>
